<compile_context>
chip_gen: v7x
topology: tpu7x:2x2x1
jax: 0.10.0
libtpu: 0.0.40
codegen_flags: <defaults>
</compile_context>

<pallas_src>
import numpy as np
import jax
import jax.numpy as jnp
from jax import lax
from jax.experimental import pallas as pl
from jax.experimental.pallas import tpu as pltpu


def _basic_block_kernel(x_ref, w1_ref, s1_ref, b1_ref, w2_ref, s2_ref, b2_ref,
                        out_ref):
    # Block shapes (one batch tile per grid step):
    #   x_ref  : (B, H, W*C)  f32   lane-packed input (also the residual)
    #   w*_ref : (3*W*C, W*C) bf16  block-Toeplitz conv weights (kw taps and
    #                               left/right padding folded in), row blocks
    #                               ordered by kh
    #   s*, b* : (1, W*C)     f32   folded BatchNorm scale / bias (tiled over w)
    #   out_ref: (B, H, W*C)        lane-packed output
    B, H, WC = x_ref.shape
    M = B * H

    x_f32 = x_ref[...]                        # single HBM read of x
    x_res = x_f32.reshape(M, WC)              # exact f32 residual

    def im2row(a):
        # a: (B, H, WC).  Returns (M, 3*WC): column block kh holds the rows
        # shifted by (kh - 1) along H, zero-padded at the image border.
        # Lane offsets of the concat are 128-aligned -> unmasked stores.
        zrow = jnp.zeros((B, 1, WC), a.dtype)
        up = jnp.concatenate([zrow, a[:, :H - 1, :]], axis=1)     # kh = 0
        dn = jnp.concatenate([a[:, 1:, :], zrow], axis=1)         # kh = 2
        return jnp.concatenate(
            [up.reshape(M, WC), a.reshape(M, WC), dn.reshape(M, WC)], axis=1)

    # ---- conv1: one MXU matmul, K = 3*W*C, N = W*C ----
    p1 = im2row(x_f32.astype(jnp.bfloat16))                       # single cast
    a1 = jnp.dot(p1, w1_ref[...], preferred_element_type=jnp.float32)

    # ---- bn1 + relu (f32 VPU, fully lane-dense) ----
    y = jnp.maximum(a1 * s1_ref[...] + b1_ref[...], 0.0)

    # ---- conv2 ----
    p2 = im2row(y.astype(jnp.bfloat16).reshape(B, H, WC))         # single cast
    a2 = jnp.dot(p2, w2_ref[...], preferred_element_type=jnp.float32)

    # ---- bn2 + residual add + relu (f32), lane-dense store ----
    z = a2 * s2_ref[...] + b2_ref[...] + x_res
    out_ref[...] = jnp.maximum(z, 0.0).reshape(B, H, WC).astype(out_ref.dtype)


def _toeplitz_weight(w_hwio, W):
    """(3, 3, Cin, C) HWIO -> (3*W*Cin, W*C) block-Toeplitz matrix, bf16.

    Row index = (kh, w_in, ci), column index = (w_out, co);
    entry = w[kh, w_in - w_out + 1, ci, co] when that kw offset is in range,
    exactly zero otherwise (the zero band implements the left/right padding).
    """
    sel = np.zeros((3, W, W), np.float32)
    for kw in range(3):
        for w in range(W):
            wp = w + kw - 1
            if 0 <= wp < W:
                sel[kw, wp, w] = 1.0
    t = jnp.einsum('kpw,hkic->hpiwc', jnp.asarray(sel), w_hwio)
    cin, c = w_hwio.shape[2], w_hwio.shape[3]
    return t.reshape(3 * W * cin, W * c).astype(jnp.bfloat16)


@jax.jit
def basic_block_pallas(x_nhwc, w1_hwio, s1, b1, w2_hwio, s2, b2):
    """BasicBlock forward (stride=1, no downsample, eval-mode BN).

    x_nhwc : (N, H, W, Cin) float32
    w*_hwio: (3, 3, Cin, C) float32 conv weights (HWIO)
    s*, b* : (1, C)         float32 folded BatchNorm scale / bias
    """
    N, H, W, Cin = x_nhwc.shape
    C = w1_hwio.shape[-1]
    assert Cin == C, "stride=1 BasicBlock with no downsample requires Cin == C"
    WC = W * C

    # Batch tile: keep >= 2 grid steps so both v7x TensorCores get work while
    # folding the rest of the batch into one step (M = B_TILE*H matmul rows)
    # to amortize per-grid-step overhead.  Cap the tile so the double-buffered
    # x/out blocks stay a few MiB (irrelevant at this test size; at real
    # shapes on v5e/v6e, with 128 MiB VMEM, the cap and vmem_limit_bytes
    # below can both be raised substantially).
    n_steps = 2 if N >= 2 else 1
    b_tile = -(-N // n_steps)
    b_tile = min(b_tile, max(1, (4 * 1024 * 1024) // (H * WC * 4)))
    n_steps = -(-N // b_tile)
    n_pad = n_steps * b_tile
    if n_pad != N:
        x_nhwc = jnp.pad(x_nhwc, ((0, n_pad - N), (0, 0), (0, 0), (0, 0)))

    # Free row-major reshape on the HBM array: lanes carry the packed (w, c).
    x_lanes = x_nhwc.reshape(n_pad, H, WC)

    # Block-Toeplitz weights (kw taps + W padding folded in), bf16 for MXU.
    w1_mat = _toeplitz_weight(w1_hwio, W)
    w2_mat = _toeplitz_weight(w2_hwio, W)

    # BN scale/bias broadcast over the packed (w, c) lane axis.
    s1_l = jnp.tile(s1.reshape(1, C), (1, W))
    b1_l = jnp.tile(b1.reshape(1, C), (1, W))
    s2_l = jnp.tile(s2.reshape(1, C), (1, W))
    b2_l = jnp.tile(b2.reshape(1, C), (1, W))

    grid_spec = pltpu.PrefetchScalarGridSpec(
        num_scalar_prefetch=0,
        grid=(n_steps,),
        in_specs=[
            pl.BlockSpec((b_tile, H, WC), lambda n: (n, 0, 0)),
            # Weights / BN params are grid-invariant (index_map -> origin).
            pl.BlockSpec((3 * WC, WC), lambda n: (0, 0)),
            pl.BlockSpec((1, WC), lambda n: (0, 0)),
            pl.BlockSpec((1, WC), lambda n: (0, 0)),
            pl.BlockSpec((3 * WC, WC), lambda n: (0, 0)),
            pl.BlockSpec((1, WC), lambda n: (0, 0)),
            pl.BlockSpec((1, WC), lambda n: (0, 0)),
        ],
        out_specs=pl.BlockSpec((b_tile, H, WC), lambda n: (n, 0, 0)),
    )
    out_lanes = pl.pallas_call(
        _basic_block_kernel,
        out_shape=jax.ShapeDtypeStruct((n_pad, H, WC), x_nhwc.dtype),
        grid_spec=grid_spec,
        compiler_params=pltpu.CompilerParams(
            dimension_semantics=("parallel",),
            # Tiny footprint at this size; at real widths raise this on
            # v5e/v6e (128 MiB physical) and keep headroom below the 64 MiB
            # physical VMEM of v7x.
            vmem_limit_bytes=32 * 1024 * 1024),
    )(x_lanes, w1_mat, s1_l, b1_l, w2_mat, s2_l, b2_l)

    return out_lanes.reshape(n_pad, H, W, C)[:N]


def _fold_bn(gamma, beta, running_mean, running_var, eps=1e-5):
    scale = gamma / jnp.sqrt(running_var + eps)
    bias = beta - running_mean * scale
    return scale.reshape(1, -1), bias.reshape(1, -1)


def _reference(x_nhwc, w1_hwio, s1, b1, w2_hwio, s2, b2):
    # Matches the kernel's numerics: bf16 conv operands, f32 accumulation,
    # f32 BN / ReLU / residual.
    dn = ("NHWC", "HWIO", "NHWC")
    y = lax.conv_general_dilated(
        x_nhwc.astype(jnp.bfloat16), w1_hwio.astype(jnp.bfloat16), (1, 1),
        "SAME", dimension_numbers=dn, preferred_element_type=jnp.float32)
    y = jnp.maximum(y * s1.reshape(1, 1, 1, -1) + b1.reshape(1, 1, 1, -1), 0.0)
    z = lax.conv_general_dilated(
        y.astype(jnp.bfloat16), w2_hwio.astype(jnp.bfloat16), (1, 1),
        "SAME", dimension_numbers=dn, preferred_element_type=jnp.float32)
    z = z * s2.reshape(1, 1, 1, -1) + b2.reshape(1, 1, 1, -1) + x_nhwc
    return jnp.maximum(z, 0.0)


if __name__ == "__main__":
    # Small shapes consistent with BasicBlock(inplanes=8, planes=8, stride=1).
    N, H, W, Cin = 4, 16, 16, 8
    C = 8  # planes (expansion = 1); W*C = 128 -> one full lane tile

    key = jax.random.PRNGKey(0)
    k = jax.random.split(key, 8)

    # Deterministic synthetic parameters (no checkpoint loading).
    x_nhwc = jax.random.normal(k[0], (N, H, W, Cin), jnp.float32)
    w1_hwio = jax.random.normal(k[1], (3, 3, Cin, C), jnp.float32) * 0.1
    w2_hwio = jax.random.normal(k[2], (3, 3, C, C), jnp.float32) * 0.1

    gamma1 = 1.0 + 0.1 * jax.random.normal(k[3], (C,), jnp.float32)
    beta1 = 0.1 * jax.random.normal(k[4], (C,), jnp.float32)
    mean1 = 0.05 * jax.random.normal(k[5], (C,), jnp.float32)
    var1 = jnp.abs(1.0 + 0.1 * jax.random.normal(k[6], (C,), jnp.float32))
    gamma2 = jnp.linspace(0.9, 1.1, C, dtype=jnp.float32)
    beta2 = jnp.linspace(-0.05, 0.05, C, dtype=jnp.float32)
    mean2 = jnp.zeros((C,), jnp.float32)
    var2 = jnp.ones((C,), jnp.float32)

    s1, b1 = _fold_bn(gamma1, beta1, mean1, var1)
    s2, b2 = _fold_bn(gamma2, beta2, mean2, var2)

    out = basic_block_pallas(x_nhwc, w1_hwio, s1, b1, w2_hwio, s2, b2)
    out = jax.block_until_ready(out)

    ref = _reference(x_nhwc, w1_hwio, s1, b1, w2_hwio, s2, b2)
    max_err = float(jnp.max(jnp.abs(out - ref)))
    assert jnp.allclose(out, ref, atol=1e-2, rtol=1e-2), max_err

    print("KERNEL_OK")
</pallas_src>

<mosaic_0001>
module attributes {stable_mosaic.version = 11 : i64} {
  func.func @_basic_block_kernel(%arg0: i32, %arg1: memref<2x16x128xf32, #tpu.memory_space<vmem>>, %arg2: memref<384x128xbf16, #tpu.memory_space<vmem>>, %arg3: memref<1x128xf32, #tpu.memory_space<vmem>>, %arg4: memref<1x128xf32, #tpu.memory_space<vmem>>, %arg5: memref<384x128xbf16, #tpu.memory_space<vmem>>, %arg6: memref<1x128xf32, #tpu.memory_space<vmem>>, %arg7: memref<1x128xf32, #tpu.memory_space<vmem>>, %arg8: memref<2x16x128xf32, #tpu.memory_space<vmem>>) attributes {dimension_semantics = [#tpu.dimension_semantics<parallel>], iteration_bounds = array<i64: 2>, scalar_prefetch = 0 : i64, scratch_operands = 0 : i64, tpu.core_type = #tpu.core_type<tc>, window_params = [{transform_indices = @transform_0, window_bounds = array<i64: 2, 16, 128>}, {pipeline_mode = #tpu.pipeline_mode<synchronous>, transform_indices = @transform_1, window_bounds = array<i64: 384, 128>}, {pipeline_mode = #tpu.pipeline_mode<synchronous>, transform_indices = @transform_2, window_bounds = array<i64: 1, 128>}, {pipeline_mode = #tpu.pipeline_mode<synchronous>, transform_indices = @transform_3, window_bounds = array<i64: 1, 128>}, {pipeline_mode = #tpu.pipeline_mode<synchronous>, transform_indices = @transform_4, window_bounds = array<i64: 384, 128>}, {pipeline_mode = #tpu.pipeline_mode<synchronous>, transform_indices = @transform_5, window_bounds = array<i64: 1, 128>}, {pipeline_mode = #tpu.pipeline_mode<synchronous>, transform_indices = @transform_6, window_bounds = array<i64: 1, 128>}, {transform_indices = @transform_7, window_bounds = array<i64: 2, 16, 128>}]} {
    %c0 = arith.constant 0 : index
    %c0_0 = arith.constant 0 : index
    %c0_1 = arith.constant 0 : index
    %0 = vector.load %arg1[%c0, %c0_0, %c0_1] : memref<2x16x128xf32, #tpu.memory_space<vmem>>, vector<2x16x128xf32>
    %1 = vector.shape_cast %0 : vector<2x16x128xf32> to vector<32x128xf32>
    %2 = arith.truncf %0 : vector<2x16x128xf32> to vector<2x16x128xbf16>
    %cst = arith.constant 0.000000e+00 : bf16
    %3 = vector.broadcast %cst : bf16 to vector<2x1x128xbf16>
    %4 = vector.extract_strided_slice %2 {offsets = [0, 0, 0], sizes = [2, 15, 128], strides = [1, 1, 1]} : vector<2x16x128xbf16> to vector<2x15x128xbf16>
    %5 = tpu.concatenate %3, %4 in 1 : vector<2x1x128xbf16>, vector<2x15x128xbf16> -> vector<2x16x128xbf16>
    %6 = vector.extract_strided_slice %2 {offsets = [0, 1, 0], sizes = [2, 15, 128], strides = [1, 1, 1]} : vector<2x16x128xbf16> to vector<2x15x128xbf16>
    %7 = tpu.concatenate %6, %3 in 1 : vector<2x15x128xbf16>, vector<2x1x128xbf16> -> vector<2x16x128xbf16>
    %8 = vector.shape_cast %5 : vector<2x16x128xbf16> to vector<32x128xbf16>
    %9 = vector.shape_cast %2 : vector<2x16x128xbf16> to vector<32x128xbf16>
    %10 = vector.shape_cast %7 : vector<2x16x128xbf16> to vector<32x128xbf16>
    %11 = tpu.concatenate %8, %9, %10 in 1 : vector<32x128xbf16>, vector<32x128xbf16>, vector<32x128xbf16> -> vector<32x384xbf16>
    %c0_2 = arith.constant 0 : index
    %c0_3 = arith.constant 0 : index
    %12 = vector.load %arg2[%c0_2, %c0_3] : memref<384x128xbf16, #tpu.memory_space<vmem>>, vector<384x128xbf16>
    %cst_4 = arith.constant dense<0.000000e+00> : vector<32x128xf32>
    %13 = tpu.matmul %11, %12, %cst_4 {dimension_numbers = #tpu.dot_dimension_numbers<[1], [0], [0], [1], [0, 0, 1, 1], [], []>} : vector<32x384xbf16>, vector<384x128xbf16>, vector<32x128xf32> -> vector<32x128xf32>
    %c0_5 = arith.constant 0 : index
    %c0_6 = arith.constant 0 : index
    %14 = vector.load %arg3[%c0_5, %c0_6] : memref<1x128xf32, #tpu.memory_space<vmem>>, vector<1x128xf32>
    %15 = vector.broadcast %14 : vector<1x128xf32> to vector<32x128xf32>
    %16 = arith.mulf %13, %15 : vector<32x128xf32>
    %c0_7 = arith.constant 0 : index
    %c0_8 = arith.constant 0 : index
    %17 = vector.load %arg4[%c0_7, %c0_8] : memref<1x128xf32, #tpu.memory_space<vmem>>, vector<1x128xf32>
    %18 = vector.broadcast %17 : vector<1x128xf32> to vector<32x128xf32>
    %19 = arith.addf %16, %18 : vector<32x128xf32>
    %cst_9 = arith.constant 0.000000e+00 : f32
    %20 = vector.broadcast %cst_9 : f32 to vector<32x128xf32>
    %21 = arith.maximumf %19, %20 : vector<32x128xf32>
    %22 = arith.truncf %21 : vector<32x128xf32> to vector<32x128xbf16>
    %23 = vector.shape_cast %22 : vector<32x128xbf16> to vector<2x16x128xbf16>
    %cst_10 = arith.constant 0.000000e+00 : bf16
    %24 = vector.broadcast %cst_10 : bf16 to vector<2x1x128xbf16>
    %25 = vector.extract_strided_slice %23 {offsets = [0, 0, 0], sizes = [2, 15, 128], strides = [1, 1, 1]} : vector<2x16x128xbf16> to vector<2x15x128xbf16>
    %26 = tpu.concatenate %24, %25 in 1 : vector<2x1x128xbf16>, vector<2x15x128xbf16> -> vector<2x16x128xbf16>
    %27 = vector.extract_strided_slice %23 {offsets = [0, 1, 0], sizes = [2, 15, 128], strides = [1, 1, 1]} : vector<2x16x128xbf16> to vector<2x15x128xbf16>
    %28 = tpu.concatenate %27, %24 in 1 : vector<2x15x128xbf16>, vector<2x1x128xbf16> -> vector<2x16x128xbf16>
    %29 = vector.shape_cast %26 : vector<2x16x128xbf16> to vector<32x128xbf16>
    %30 = vector.shape_cast %23 : vector<2x16x128xbf16> to vector<32x128xbf16>
    %31 = vector.shape_cast %28 : vector<2x16x128xbf16> to vector<32x128xbf16>
    %32 = tpu.concatenate %29, %30, %31 in 1 : vector<32x128xbf16>, vector<32x128xbf16>, vector<32x128xbf16> -> vector<32x384xbf16>
    %c0_11 = arith.constant 0 : index
    %c0_12 = arith.constant 0 : index
    %33 = vector.load %arg5[%c0_11, %c0_12] : memref<384x128xbf16, #tpu.memory_space<vmem>>, vector<384x128xbf16>
    %cst_13 = arith.constant dense<0.000000e+00> : vector<32x128xf32>
    %34 = tpu.matmul %32, %33, %cst_13 {dimension_numbers = #tpu.dot_dimension_numbers<[1], [0], [0], [1], [0, 0, 1, 1], [], []>} : vector<32x384xbf16>, vector<384x128xbf16>, vector<32x128xf32> -> vector<32x128xf32>
    %c0_14 = arith.constant 0 : index
    %c0_15 = arith.constant 0 : index
    %35 = vector.load %arg6[%c0_14, %c0_15] : memref<1x128xf32, #tpu.memory_space<vmem>>, vector<1x128xf32>
    %36 = vector.broadcast %35 : vector<1x128xf32> to vector<32x128xf32>
    %37 = arith.mulf %34, %36 : vector<32x128xf32>
    %c0_16 = arith.constant 0 : index
    %c0_17 = arith.constant 0 : index
    %38 = vector.load %arg7[%c0_16, %c0_17] : memref<1x128xf32, #tpu.memory_space<vmem>>, vector<1x128xf32>
    %39 = vector.broadcast %38 : vector<1x128xf32> to vector<32x128xf32>
    %40 = arith.addf %37, %39 : vector<32x128xf32>
    %41 = arith.addf %40, %1 : vector<32x128xf32>
    %cst_18 = arith.constant 0.000000e+00 : f32
    %42 = vector.broadcast %cst_18 : f32 to vector<32x128xf32>
    %43 = arith.maximumf %41, %42 : vector<32x128xf32>
    %44 = vector.shape_cast %43 : vector<32x128xf32> to vector<2x16x128xf32>
    %c0_19 = arith.constant 0 : index
    %c0_20 = arith.constant 0 : index
    %c0_21 = arith.constant 0 : index
    %45 = vector.load %arg8[%c0_19, %c0_20, %c0_21] : memref<2x16x128xf32, #tpu.memory_space<vmem>>, vector<2x16x128xf32>
    tpu.vector_store %arg8[%c0_19, %c0_20, %c0_21], %44 {strides = array<i32>} : memref<2x16x128xf32, #tpu.memory_space<vmem>>, vector<2x16x128xf32>,
    return
  }
  func.func @transform_0(%arg0: i32) -> (i32, i32, i32) {
    %c0_i32 = arith.constant 0 : i32
    %c0_i32_0 = arith.constant 0 : i32
    %c0_i32_1 = arith.constant 0 : i32
    return %arg0, %c0_i32, %c0_i32_0 : i32, i32, i32
  }
  func.func @transform_1(%arg0: i32) -> (i32, i32) {
    %c0_i32 = arith.constant 0 : i32
    %c0_i32_0 = arith.constant 0 : i32
    %c0_i32_1 = arith.constant 0 : i32
    return %c0_i32, %c0_i32_0 : i32, i32
  }
  func.func @transform_2(%arg0: i32) -> (i32, i32) {
    %c0_i32 = arith.constant 0 : i32
    %c0_i32_0 = arith.constant 0 : i32
    %c0_i32_1 = arith.constant 0 : i32
    return %c0_i32, %c0_i32_0 : i32, i32
  }
  func.func @transform_3(%arg0: i32) -> (i32, i32) {
    %c0_i32 = arith.constant 0 : i32
    %c0_i32_0 = arith.constant 0 : i32
    %c0_i32_1 = arith.constant 0 : i32
    return %c0_i32, %c0_i32_0 : i32, i32
  }
  func.func @transform_4(%arg0: i32) -> (i32, i32) {
    %c0_i32 = arith.constant 0 : i32
    %c0_i32_0 = arith.constant 0 : i32
    %c0_i32_1 = arith.constant 0 : i32
    return %c0_i32, %c0_i32_0 : i32, i32
  }
  func.func @transform_5(%arg0: i32) -> (i32, i32) {
    %c0_i32 = arith.constant 0 : i32
    %c0_i32_0 = arith.constant 0 : i32
    %c0_i32_1 = arith.constant 0 : i32
    return %c0_i32, %c0_i32_0 : i32, i32
  }
  func.func @transform_6(%arg0: i32) -> (i32, i32) {
    %c0_i32 = arith.constant 0 : i32
    %c0_i32_0 = arith.constant 0 : i32
    %c0_i32_1 = arith.constant 0 : i32
    return %c0_i32, %c0_i32_0 : i32, i32
  }
  func.func @transform_7(%arg0: i32) -> (i32, i32, i32) {
    %c0_i32 = arith.constant 0 : i32
    %c0_i32_0 = arith.constant 0 : i32
    %c0_i32_1 = arith.constant 0 : i32
    return %arg0, %c0_i32, %c0_i32_0 : i32, i32, i32
  }
}

</mosaic_0001>

<bundles_post_ra>
// kernel: basic_block_pallas.1
= control target key start
LH: loop header
LB: loop body
LE: loop exit
PB: predicated region body
PF: predicated region fallthrough
CT: control target
= control target key end

     0   :  { %s1339_s24 = smov 0   ;;  %s1561_s0 = inlined_call_operand.vmem [shape: f32[4,16,128], index: 0, kind: input, shape index: {}]   ;;  %s1562_s1 = inlined_call_operand.vmem [shape: bf16[384,128], index: 1, kind: input, shape index: {}]   ;;  %s1563_s2 = inlined_call_operand.vmem [shape: f32[1,128], index: 2, kind: input, shape index: {}]   ;;  %s1564_s3 = inlined_call_operand.vmem [shape: f32[1,128], index: 3, kind: input, shape index: {}]   ;;  %s1565_s4 = inlined_call_operand.vmem [shape: bf16[384,128], index: 4, kind: input, shape index: {}]   ;;  %s1566_s5 = inlined_call_operand.vmem [shape: f32[1,128], index: 5, kind: input, shape index: {}]   ;;  %s1567_s6 = inlined_call_operand.vmem [shape: f32[1,128], index: 6, kind: input, shape index: {}]   ;;  %s1568_s7 = inlined_call_operand.vmem [shape: f32[4,16,128], index: 7, kind: output, shape index: {}]  }
   0x1 LB: > { %s1052_s25 = sadd.s32 4294967295, %s1297_s24   ;;  %p1056_p0 = scmp.ge.s32.totalorder %s1297_s24, 1  ;;  %s1297_s24 = sphi %s1339_s24, %s17_s24  }
   0x2   : > { %p239_p1 = scmp.lt.s32.totalorder %s1297_s24, 3 }
   0x4   : > { %p240_p2 = pnand %p1056_p0, %p239_p1 }
   0x5   : > { %v1243_v0 = vld [vmem:[%s1562_s1 + $0x40] sm:$0xff] (!%p240_p2)   ;;  %v1246_v3 = vld [vmem:[%s1562_s1 + $0x48] sm:$0xff] (!%p240_p2)   ;;  %v1249_v6 = vld [vmem:[%s1562_s1 + $0x50] sm:$0xff] (!%p240_p2)   ;;  %s1057_s19 = sshll.u32 (!%p240_p2), %s1052_s25, 1  ;;  %vm321_vm0 = vcmask (!%p240_p2), 1047552   ;;  %vm310_vm1 = vcmask (!%p240_p2), 1040384  }
   0x6   : > { %243 = sbr.rel (%p240_p2) target bundleno = 509 (0x1fd), region = 48  ;;  %v1244_v1 = vld [vmem:[%s1562_s1 + $0x80] sm:$0xff] (!%p240_p2)   ;;  %1119 = vmatprep.subr.bf16.mxu0 (!%p240_p2), %v1243_v0  ;;  %v1247_v4 = vld [vmem:[%s1562_s1 + $0x88] sm:$0xff] (!%p240_p2)   ;;  %v1250_v7 = vld [vmem:[%s1562_s1 + $0x90] sm:$0xff] (!%p240_p2)   ;;  %p274_p3 = scmp.lt.s32.totalorder (!%p240_p2), %s1057_s19, 3 }
   0x7   : > { %v1245_v2 = vld [vmem:[%s1562_s1] sm:$0xff] (!%p240_p2)   ;;  %1195 = vmatprep.subr.bf16.mxu1 (!%p240_p2), %v1244_v1  ;;  %v1248_v5 = vld [vmem:[%s1562_s1 + $0x8] sm:$0xff] (!%p240_p2)   ;;  %v1251_v8 = vld [vmem:[%s1562_s1 + $0x10] sm:$0xff] (!%p240_p2)   ;;  %vm322_vm2 = vsmask.f32 (!%p240_p2), 7424 }
   0x8   : > { %1120 = vmatpush3.bf16.msra.mxu0 (!%p240_p2), %v1245_v2  ;;  %1196 = vmatpush3.bf16.msra.mxu1 (!%p240_p2), %v1244_v1  ;;  %v1252_v9 = vld [vmem:[%s1562_s1 + $0x58] sm:$0xff] (!%p240_p2)   ;;  %v1255_v12 = vld [vmem:[%s1562_s1 + $0x60] sm:$0xff] (!%p240_p2)   ;;  %v1258_v15 = vld [vmem:[%s1562_s1 + $0x68] sm:$0xff] (!%p240_p2)   ;;  %vm311_vm3 = vsmask.f32 (!%p240_p2), 256 }
   0x9   : > { %1121 = vmatprep.subr.bf16.mxu0 (!%p240_p2), %v1246_v3  ;;  %1197 = vmatprep.subr.bf16.mxu1 (!%p240_p2), %v1247_v4  ;;  %v1253_v10 = vld [vmem:[%s1562_s1 + $0x98] sm:$0xff] (!%p240_p2)   ;;  %v1256_v13 = vld [vmem:[%s1562_s1 + $0xa0] sm:$0xff] (!%p240_p2)   ;;  %v1259_v16 = vld [vmem:[%s1562_s1 + $0xa8] sm:$0xff] (!%p240_p2)  }
   0xa   : > { %v1254_v11 = vld [vmem:[%s1562_s1 + $0x18] sm:$0xff] (!%p240_p2)   ;;  %v1257_v14 = vld [vmem:[%s1562_s1 + $0x20] sm:$0xff] (!%p240_p2)   ;;  %v1260_v17 = vld [vmem:[%s1562_s1 + $0x28] sm:$0xff] (!%p240_p2)  }
   0xb   : > { %v1261_v18 = vld [vmem:[%s1562_s1 + $0x70] sm:$0xff] (!%p240_p2)   ;;  %v1264_v21 = vld [vmem:[%s1562_s1 + $0x78] sm:$0xff] (!%p240_p2)   ;;  %vm1440_vm4 = vmand (!%p240_p2), %vm321_vm0, %vm322_vm2 }
   0xc   : > { %1122 = vmatpush3.bf16.msra.mxu0 (!%p240_p2), %v1248_v5  ;;  %1198 = vmatpush3.bf16.msra.mxu1 (!%p240_p2), %v1247_v4  ;;  %v1262_v19 = vld [vmem:[%s1562_s1 + $0xb0] sm:$0xff] (!%p240_p2)   ;;  %v1265_v24 = vld [vmem:[%s1562_s1 + $0xb8] sm:$0xff] (!%p240_p2)   ;;  %v1267_v37 = vld [vmem:[%s1565_s4 + $0x40] sm:$0xff] (!%p240_p2)  }
   0xd   : > { %1123 = vmatprep.subr.bf16.mxu0 %v1249_v6  ;;  %1199 = vmatprep.subr.bf16.mxu1 %v1250_v7  ;;  %s1574_s19 = smov (!%p274_p3, %s1057_s19), 3  ;;  %v1263_v20 = vld [vmem:[%s1562_s1 + $0x30] sm:$0xff]   ;;  %v1266_v28 = vld [vmem:[%s1562_s1 + $0x38] sm:$0xff]   ;;  %vm1448_vm5 = vmand %vm310_vm1, %vm311_vm3 }
   0xe   : > { %s1117_s16 = sshll.u32 %s1574_s19, 4  ;;  %v1268_v41 = vld [vmem:[%s1565_s4] sm:$0xff]   ;;  %v1269_v44 = vld [vmem:[%s1565_s4 + $0x48] sm:$0xff]   ;;  %v1271_v53 = vld [vmem:[%s1565_s4 + $0x50] sm:$0xff]  }
   0xf   : > { %s278_s28 = scalar_lea.vmem %s1561_s0, %s1117_s16  ;;  %v1272_v47 = vld [vmem:[%s1565_s4 + $0x80] sm:$0xff]   ;;  %v1270_v52 = vld [vmem:[%s1565_s4 + $0x8] sm:$0xff]   ;;  %v1273_v54 = vld [vmem:[%s1565_s4 + $0x10] sm:$0xff]   ;;  %s285_s11 = scalar_lea.vmem %s1568_s7, %s1117_s16 }
  0x10   : > { %1124 = vmatpush3.bf16.msra.mxu0 %v1251_v8  ;;  %1200 = vmatpush3.bf16.msra.mxu1 %v1250_v7  ;;  %v1421_v22 = vld [vmem:[%s278_s28] sm:$0xff]  ;;  %v1423_v23 = vld [vmem:[%s278_s28 + $0x8] sm:$0xff]  ;;  %v1430_v26 = vld [vmem:[%s278_s28 + $0x10] sm:$0xff] }
  0x11   : > { %1125 = vmatprep.subr.bf16.mxu0 %v1252_v9  ;;  %1201 = vmatprep.subr.bf16.mxu1 %v1253_v10  ;;  %v292_v25 = vpack.c.bf16 %v1423_v23, %v1421_v22  ;;  %v1432_v27 = vld [vmem:[%s278_s28 + $0x18] sm:$0xff]  ;;  %v1275_v56 = vld [vmem:[%s1565_s4 + $0x88] sm:$0xff]   ;;  %v1277_v58 = vld [vmem:[%s1565_s4 + $0x60] sm:$0xff]  }
  0x12   : > { %v293_v29 = vpack.c.bf16 %v1432_v27, %v1430_v26  ;;  %v1274_v55 = vld [vmem:[%s1565_s4 + $0x58] sm:$0xff]   ;;  %v1278_v59 = vld [vmem:[%s1565_s4 + $0x90] sm:$0xff]   ;;  %v1279_v60 = vld [vmem:[%s1565_s4 + $0x20] sm:$0xff]  }
  0x13   : > { %550 = vmatprep.mubr.bf16.mxu0 %v292_v25  ;;  %v295_v30 = vshrl.u32 %v292_v25, 16  ;;  %v298_v31 = vshll.u32 %v292_v25, 16  ;;  %v1276_v57 = vld [vmem:[%s1565_s4 + $0x18] sm:$0xff]   ;;  %v1280_v61 = vld [vmem:[%s1565_s4 + $0x68] sm:$0xff]   ;;  %v1283_v0 = vld [vmem:[%s1565_s4 + $0x70] sm:$0xff]  }
  0x14   : > { %1126 = vmatpush3.bf16.msra.mxu0 %v1254_v11  ;;  %1202 = vmatpush3.bf16.msra.mxu1 %v1253_v10  ;;  %v302_v32 = vshrl.u32 %v293_v29, 16  ;;  %v305_v33 = vshll.u32 %v293_v29, 16  ;;  %v1281_v62 = vld [vmem:[%s1565_s4 + $0x98] sm:$0xff]   ;;  %v1282_v63 = vld [vmem:[%s1565_s4 + $0x28] sm:$0xff]   ;;  %v1284_v1 = vld [vmem:[%s1565_s4 + $0xa0] sm:$0xff]  }
  0x15   : > { %1127 = vmatprep.subr.bf16.mxu0 %v1255_v12  ;;  %1203 = vmatprep.subr.bf16.mxu1 %v1256_v13  ;;  %v315_v34 = vrot.slane %v298_v31, 1  ;;  %v297_v36 = vrot.slane %v295_v30, 7  ;;  %v1285_v2 = vld [vmem:[%s1565_s4 + $0x30] sm:$0xff]   ;;  %v1286_v3 = vld [vmem:[%s1565_s4 + $0x78] sm:$0xff]   ;;  %v1287_v4 = vld [vmem:[%s1565_s4 + $0xa8] sm:$0xff]  }
  0x16   : > { %v317_v39 = vrot.slane %v305_v33, 1  ;;  %v304_v40 = vrot.slane %v302_v32, 7  ;;  %v1288_v5 = vld [vmem:[%s1565_s4 + $0x38] sm:$0xff]   ;;  %v1289_v6 = vld [vmem:[%s1565_s4 + $0xb0] sm:$0xff]  }
  0x17   : > { %v316_v42 = vor.u32 %v315_v34, %v295_v30  ;;  %v300_v43 = vor.u32 %v298_v31, %v297_v36  ;;  %v1290_v7 = vld [vmem:[%s1565_s4 + $0xb8] sm:$0xff]  }
  0x18   : > { %1128 = vmatpush3.bf16.msra.mxu0 %v1257_v14  ;;  %1204 = vmatpush3.bf16.msra.mxu1 %v1256_v13  ;;  %v318_v45 = vor.u32 %v317_v39, %v302_v32  ;;  %v307_v46 = vor.u32 %v305_v33, %v304_v40 }
  0x19   : > { %1129 = vmatprep.subr.bf16.mxu0 %v1258_v15  ;;  %1205 = vmatprep.subr.bf16.mxu1 %v1259_v16  ;;  %v324_v48 = vsel %vm1440_vm4, %v316_v42, 0  ;;  %v313_v49 = vsel %vm1448_vm5, 0, %v300_v43  ;;  %v1087_v15 = vld [vmem:[%s1563_s2] ss:$0 sm:$0xff] }
  0x1a   : > { %1211 = vmatprep.mubr.bf16.mxu1 %v324_v48  ;;  %v325_v50 = vsel %vm1440_vm4, %v318_v45, 0  ;;  %v314_v51 = vsel %vm1448_vm5, 0, %v307_v46 }
  0x1c   : > { %1130 = vmatpush3.bf16.msra.mxu0 %v1260_v17  ;;  %1206 = vmatpush3.bf16.msra.mxu1 %v1259_v16 }
  0x1d   : > { %1131 = vmatprep.subr.bf16.mxu0 %v1261_v18  ;;  %1207 = vmatprep.subr.bf16.mxu1 %v1262_v19 }
  0x20   : > { %1132 = vmatpush3.bf16.msra.mxu0 %v1263_v20  ;;  %1208 = vmatpush3.bf16.msra.mxu1 %v1262_v19  ;;  %v1088_v20 = vld [vmem:[%s1564_s3] ss:$0 sm:$0xff] }
  0x21   : > { %1133 = vmatprep.subr.bf16.mxu0 %v1264_v21  ;;  %1209 = vmatprep.subr.bf16.mxu1 %v1265_v24 }
  0x24   : > { %1134 = vmatpush3.bf16.msra.mxu0 %v1266_v28  ;;  %1210 = vmatpush3.bf16.msra.mxu1 %v1265_v24 }
  0x25   : > { %1157 = vmatprep.subr.bf16.mxu0 %v1267_v37  ;;  %1215 = vmatprep.subr.bf16.mxu1 %v1272_v47 }
  0x27   : > { %551 = vmatmul.mubr.bf16.vlgmr.msra.gmra.mrb[0].mxu0 %v313_v49  ;;  %1212 = vmatmul.mubr.bf16.vlgmr.msra.gmra.mrb[0].mxu1 %v325_v50 }
  0x28   : > { %558 = vmatprep.mubr.bf16.mxu0 %v293_v29  ;;  %1158 = vmatpush3.bf16.msra.mxu0 %v1268_v41 }
  0x29   : > { %1159 = vmatprep.subr.bf16.mxu0 %v1269_v44  ;;  %1216 = vmatpush3.bf16.msra.mxu1 %v1272_v47 }
  0x2a   : > { %1217 = vmatprep.subr.bf16.mxu1 %v1275_v56 }
  0x2c   : > { %1160 = vmatpush3.bf16.msra.mxu0 %v1270_v52 }
  0x2d   : > { %1161 = vmatprep.subr.bf16.mxu0 %v1271_v53  ;;  %1218 = vmatpush3.bf16.msra.mxu1 %v1275_v56 }
  0x2e   : > { %1219 = vmatprep.subr.bf16.mxu1 %v1278_v59 }
  0x2f   : > { %559 = vmatmul.mubr.bf16.gmra.mrb[4].mxu0 %v314_v51 }
  0x30   : > { %1162 = vmatpush3.bf16.msra.mxu0 %v1273_v54 }
  0x31   : > { %1163 = vmatprep.subr.bf16.mxu0 %v1274_v55  ;;  %1220 = vmatpush3.bf16.msra.mxu1 %v1278_v59 }
  0x32   : > { %1221 = vmatprep.subr.bf16.mxu1 %v1281_v62 }
  0x34   : > { %1164 = vmatpush3.bf16.msra.mxu0 %v1276_v57 }
  0x35   : > { %1165 = vmatprep.subr.bf16.mxu0 %v1277_v58  ;;  %1222 = vmatpush3.bf16.msra.mxu1 %v1281_v62 }
  0x36   : > { %1223 = vmatprep.subr.bf16.mxu1 %v1284_v1 }
  0x38   : > { %1166 = vmatpush3.bf16.msra.mxu0 %v1279_v60 }
  0x39   : > { %1167 = vmatprep.subr.bf16.mxu0 %v1280_v61  ;;  %1224 = vmatpush3.bf16.msra.mxu1 %v1284_v1 }
  0x3a   : > { %1225 = vmatprep.subr.bf16.mxu1 %v1287_v4 }
  0x3c   : > { %1168 = vmatpush3.bf16.msra.mxu0 %v1282_v63 }
  0x3d   : > { %1169 = vmatprep.subr.bf16.mxu0 %v1283_v0  ;;  %1226 = vmatpush3.bf16.msra.mxu1 %v1287_v4 }
  0x3e   : > { %1227 = vmatprep.subr.bf16.mxu1 %v1289_v6 }
  0x40   : > { %1170 = vmatpush3.bf16.msra.mxu0 %v1285_v2 }
  0x41   : > { %1171 = vmatprep.subr.bf16.mxu0 %v1286_v3  ;;  %1228 = vmatpush3.bf16.msra.mxu1 %v1289_v6 }
  0x42   : > { %1229 = vmatprep.subr.bf16.mxu1 %v1290_v7 }
  0x44   : > { %1172 = vmatpush3.bf16.msra.mxu0 %v1288_v5 }
  0x45   : > { %1230 = vmatpush3.bf16.msra.mxu1 %v1290_v7 }
  0xfa   : > { %v1135_v8 = vpop.f32.mrb[0].mxu0  ;;  %v1213_v9 = vpop.f32.mrb[0].mxu1 }
  0xfb   : > { %v1136_v10 = vpop.f32.mrb[1].mxu0  ;;  %v601_v11 = vpop.f32.mrb[1].mxu1 }
  0xfc   : > { %v1137_v12 = vadd.f32 %v1136_v10, %v1135_v8  ;;  %v1138_v13 = vpop.f32.mrb[2].mxu0  ;;  %v1214_v14 = vpop.f32.mrb[2].mxu1 }
  0xfd   : > { %v1139_v16 = vpop.f32.mrb[3].mxu0  ;;  %v604_v17 = vpop.f32.mrb[3].mxu1 }
  0xfe   : > { %v602_v18 = vadd.f32 %v1137_v12, %v601_v11  ;;  %v1140_v19 = vadd.f32 %v1139_v16, %v1138_v13  ;;  %v1113_v11 = vld [vmem:[%s1566_s5] ss:$0 sm:$0xff] }
 0x100   : > { %v623_v21 = vmul.f32 %v1087_v15, %v602_v18  ;;  %v605_v24 = vadd.f32 %v1140_v19, %v604_v17 }
 0x102   : > { %v634_v25 = vadd.f32 %v1088_v20, %v623_v21  ;;  %v624_v28 = vmul.f32 %v1087_v15, %v605_v24  ;;  %v1141_v29 = vpop.f32.mrb[4].mxu0 }
 0x103   : > { %v1142_v30 = vpop.f32.mrb[5].mxu0 }
 0x104   : > { %v635_v31 = vadd.f32 %v1088_v20, %v624_v28  ;;  %v1143_v32 = vadd.f32 %v1142_v30, %v1141_v29  ;;  %v1144_v33 = vpop.f32.mrb[6].mxu0  ;;  %v638_v36 = vmax.f32 %v634_v25, 0.0 }
 0x105   : > { %v1145_v34 = vpop.f32.mrb[7].mxu0 }
 0x106   : > { %v639_v37 = vmax.f32 %v635_v31, 0.0  ;;  %v610_v39 = vadd.f32 %v1213_v9, %v1143_v32  ;;  %v1146_v40 = vadd.f32 %v1145_v34, %v1144_v33 }
 0x108   : > { %v625_v41 = vmul.f32 %v1087_v15, %v610_v39  ;;  %v613_v42 = vadd.f32 %v1214_v14, %v1146_v40  ;;  %v642_v43 = vpack.c.bf16 %v639_v37, %v638_v36 }
 0x10a   : > { %v626_v44 = vmul.f32 %v1087_v15, %v613_v42  ;;  %v645_v45 = vshrl.u32 %v642_v43, 16  ;;  %v648_v46 = vshll.u32 %v642_v43, 16  ;;  %894 = vmatprep.mubr.bf16.mxu0 %v642_v43  ;;  %v636_v47 = vadd.f32 %v1088_v20, %v625_v41  ;;  %v1114_v15 = vld [vmem:[%s1567_s6] ss:$0 sm:$0xff] }
 0x10c   : > { %v647_v48 = vrot.slane %v645_v45, 7  ;;  %v662_v49 = vrot.slane %v648_v46, 1  ;;  %v637_v50 = vadd.f32 %v1088_v20, %v626_v44  ;;  %v640_v53 = vmax.f32 %v636_v47, 0.0 }
 0x10e   : > { %v650_v51 = vor.u32 %v648_v46, %v647_v48  ;;  %v663_v52 = vor.u32 %v662_v49, %v645_v45  ;;  %v641_v54 = vmax.f32 %v637_v50, 0.0 }
 0x110   : > { %v660_v55 = vsel %vm1448_vm5, 0, %v650_v51  ;;  %v668_v56 = vsel %vm1440_vm4, %v663_v52, 0  ;;  %v643_v57 = vpack.c.bf16 %v641_v54, %v640_v53 }
 0x111   : > { %895 = vmatmul.mubr.bf16.vlgmr.msra.gmra.mrb[8].mxu0 %v660_v55  ;;  %1231 = vmatprep.mubr.bf16.mxu1 %v668_v56 }
 0x112   : > { %902 = vmatprep.mubr.bf16.mxu0 %v643_v57  ;;  %v652_v58 = vshrl.u32 %v643_v57, 16  ;;  %v655_v59 = vshll.u32 %v643_v57, 16 }
 0x114   : > { %v654_v60 = vrot.slane %v652_v58, 7  ;;  %v664_v61 = vrot.slane %v655_v59, 1 }
 0x116   : > { %v657_v62 = vor.u32 %v655_v59, %v654_v60  ;;  %v665_v63 = vor.u32 %v664_v61, %v652_v58 }
 0x118   : > { %v661_v0 = vsel %vm1448_vm5, 0, %v657_v62  ;;  %v669_v1 = vsel %vm1440_vm4, %v665_v63, 0 }
 0x119   : > { %903 = vmatmul.mubr.bf16.gmra.mrb[12].mxu0 %v661_v0  ;;  %1232 = vmatmul.mubr.bf16.vlgmr.msra.gmra.mrb[4].mxu1 %v669_v1 }
 0x1e4   : > { %v1173_v2 = vpop.f32.mrb[8].mxu0 }
 0x1e5   : > { %v1174_v3 = vpop.f32.mrb[9].mxu0 }
 0x1e6   : > { %v1175_v4 = vadd.f32 %v1174_v3, %v1173_v2  ;;  %v1176_v5 = vpop.f32.mrb[10].mxu0 }
 0x1e7   : > { %v1177_v6 = vpop.f32.mrb[11].mxu0 }
 0x1e8   : > { %v1178_v7 = vadd.f32 %v1177_v6, %v1176_v5 }
 0x1ec   : > { %v1179_v8 = vpop.f32.mrb[12].mxu0  ;;  %v1233_v9 = vpop.f32.mrb[4].mxu1 }
 0x1ed   : > { %v1180_v10 = vpop.f32.mrb[13].mxu0  ;;  %v945_v38 = vpop.f32.mrb[5].mxu1 }
 0x1ee   : > { %v1181_v12 = vadd.f32 %v1180_v10, %v1179_v8  ;;  %v946_v13 = vadd.f32 %v1175_v4, %v945_v38  ;;  %v1182_v35 = vpop.f32.mrb[14].mxu0  ;;  %v1234_v14 = vpop.f32.mrb[6].mxu1 }
 0x1ef   : > { %v1183_v16 = vpop.f32.mrb[15].mxu0  ;;  %v948_v17 = vpop.f32.mrb[7].mxu1 }
 0x1f0   : > { %v954_v18 = vadd.f32 %v1233_v9, %v1181_v12  ;;  %v967_v19 = vmul.f32 %v1113_v11, %v946_v13  ;;  %v1184_v20 = vadd.f32 %v1183_v16, %v1182_v35  ;;  %v949_v21 = vadd.f32 %v1178_v7, %v948_v17 }
 0x1f2   : > { %v969_v24 = vmul.f32 %v1113_v11, %v954_v18  ;;  %v978_v25 = vadd.f32 %v1114_v15, %v967_v19  ;;  %v957_v28 = vadd.f32 %v1234_v14, %v1184_v20  ;;  %v968_v29 = vmul.f32 %v1113_v11, %v949_v21 }
 0x1f4   : > { %v980_v30 = vadd.f32 %v1114_v15, %v969_v24  ;;  %v982_v31 = vadd.f32 %v978_v25, %v1421_v22  ;;  %v970_v32 = vmul.f32 %v1113_v11, %v957_v28  ;;  %v979_v33 = vadd.f32 %v1114_v15, %v968_v29 }
 0x1f6   : > { %v984_v34 = vadd.f32 %v980_v30, %v1430_v26  ;;  %v986_v36 = vmax.f32 %v982_v31, 0.0  ;;  %v981_v37 = vadd.f32 %v1114_v15, %v970_v32  ;;  %v983_v39 = vadd.f32 %v979_v33, %v1423_v23 }
 0x1f8   : > { %v988_v40 = vmax.f32 %v984_v34, 0.0  ;;  %990 = vst [vmem:[%s285_s11] sm:$0xff] %v986_v36  ;;  %v985_v41 = vadd.f32 %v981_v37, %v1432_v27  ;;  %v987_v42 = vmax.f32 %v983_v39, 0.0 }
 0x1fa   : > { %992 = vst [vmem:[%s285_s11 + $0x10] sm:$0xff] %v988_v40  ;;  %v989_v22 = vmax.f32 %v985_v41, 0.0  ;;  %991 = vst [vmem:[%s285_s11 + $0x8] sm:$0xff] %v987_v42 }
 0x1fc   : > { %993 = vst [vmem:[%s285_s11 + $0x18] sm:$0xff] %v989_v22 }
 0x1fd PF: > { %s17_s24 = sadd.s32 1, %s1297_s24  }
 0x1fe   : > { %p14_p4 = scmp.ge.s32.totalorder %s17_s24, 4  }
 0x200   :  { %16 = sbr.rel (!%p14_p4) target bundleno = 1 (0x1), region = 78 }

</bundles_post_ra>
